<compile_context>
chip_gen: v5e
topology: v5e:2x2
jax: 0.10.0
libtpu: 0.0.40
codegen_flags: <defaults>
</compile_context>

<pallas_src>
import jax
import jax.numpy as jnp
from jax import lax
from jax.experimental import pallas as pl
from jax.experimental.pallas import tpu as pltpu


def _round_up(x, m):
    return (x + m - 1) // m * m


def _matmul_bias_kernel(p_ref, w_ref, b_ref, o_ref):
    # p_ref: (tm, K_pad) bf16 im2col tile (all taps folded into lanes)
    # w_ref: (K_pad, tn) bf16 BN-scale-folded weights (VMEM-resident)
    # b_ref: (1, tn)     f32 folded BN bias
    # o_ref: (tm, tn)    output tile
    o_ref[...] = (jnp.dot(p_ref[...], w_ref[...],
                          preferred_element_type=jnp.float32)
                  + b_ref[...]).astype(o_ref.dtype)


def _matmul_bias_acc_kernel(p_ref, w_ref, b_ref, o_ref, acc_ref):
    # Fallback for very deep contractions (KH*KW*Cin > 512): k-tiled reduction.
    k = pl.program_id(2)

    @pl.when(k == 0)
    def _():
        acc_ref[...] = jnp.broadcast_to(b_ref[...], acc_ref.shape
                                        ).astype(jnp.float32)

    acc_ref[...] += jnp.dot(p_ref[...], w_ref[...],
                            preferred_element_type=jnp.float32)

    @pl.when(k == pl.num_programs(2) - 1)
    def _():
        o_ref[...] = acc_ref[...].astype(o_ref.dtype)


def basic_conv2d(x_nchw, weight_oihw, gamma, beta, running_mean, running_var,
                 *, stride=1, padding=0, dilation=1, eps=1e-5):
    """Conv2d(bias=False) + BatchNorm2d(eval) — matches BasicConv2d.forward (no ReLU)."""
    N, Cin, H, W = x_nchw.shape
    Cout, _, KH, KW = weight_oihw.shape

    # Output spatial dims (PyTorch conv formula).
    Ho = (H + 2 * padding - dilation * (KH - 1) - 1) // stride + 1
    Wo = (W + 2 * padding - dilation * (KW - 1) - 1) // stride + 1
    M = N * Ho * Wo
    K_raw = KH * KW * Cin
    Cout_pad = _round_up(Cout, 128)

    # Eval-mode BN folding: y = conv(x, w * scale) + (beta - mean * scale).
    scale = gamma / jnp.sqrt(running_var + eps)            # (Cout,)
    bias = beta - running_mean * scale                     # (Cout,)

    # ---- wrapper-side im2col, all in bf16 (layout work stays out of kernel) ----
    x_bf = x_nchw.astype(jnp.bfloat16)
    x_nhwc = jnp.transpose(x_bf, (0, 2, 3, 1))
    x_pad = jnp.pad(
        x_nhwc, ((0, 0), (padding, padding), (padding, padding), (0, 0)))

    taps = []
    for kh in range(KH):
        for kw in range(KW):
            h0 = kh * dilation
            w0 = kw * dilation
            tap = lax.slice(
                x_pad,
                (0, h0, w0, 0),
                (N, h0 + (Ho - 1) * stride + 1,
                 w0 + (Wo - 1) * stride + 1, Cin),
                (1, stride, stride, 1))                    # (N, Ho, Wo, Cin)
            taps.append(tap)
    # Fold taps into the contraction dim: order (kh, kw, cin) matches HWIO weights.
    patches = jnp.concatenate(taps, axis=-1).reshape(M, K_raw)

    # ---- tile selection ----
    tn = Cout_pad if Cout_pad <= 512 else 256
    tm = min(1024, _round_up(M, 16))                       # bf16 packs 16 rows/vreg
    M_pad = _round_up(M, tm)

    K_pad = _round_up(K_raw, 128)
    single_shot = K_pad <= 512
    tk = K_pad
    if not single_shot:
        tk = 512
        K_pad = _round_up(K_raw, tk)

    patches = jnp.pad(patches, ((0, M_pad - M), (0, K_pad - K_raw)))

    # Weights: OIHW -> HWIO, fold BN scale, flatten taps, pad, cast bf16.
    w_hwio = jnp.transpose(weight_oihw, (2, 3, 1, 0)) * scale[None, None, None, :]
    w_mat = w_hwio.reshape(K_raw, Cout)
    w_mat = jnp.pad(w_mat, ((0, K_pad - K_raw), (0, Cout_pad - Cout)))
    w_mat = w_mat.astype(jnp.bfloat16)

    bias_pad = jnp.pad(bias, (0, Cout_pad - Cout)).astype(jnp.float32)
    bias_pad = bias_pad.reshape(1, Cout_pad)

    flops = 2 * M_pad * K_pad * Cout_pad
    bytes_accessed = (M_pad * K_pad * 2                    # bf16 patches
                      + K_pad * Cout_pad * 2               # bf16 weights (resident)
                      + Cout_pad * 4                       # bias
                      + M_pad * Cout_pad * 4)              # f32 output
    cost = pl.CostEstimate(flops=flops, transcendentals=0,
                           bytes_accessed=bytes_accessed)

    if single_shot:
        out = pl.pallas_call(
            _matmul_bias_kernel,
            out_shape=jax.ShapeDtypeStruct((M_pad, Cout_pad), x_nchw.dtype),
            grid_spec=pltpu.PrefetchScalarGridSpec(
                num_scalar_prefetch=0,
                grid=(M_pad // tm, Cout_pad // tn),
                in_specs=[
                    pl.BlockSpec((tm, K_pad), lambda i, j: (i, 0)),
                    pl.BlockSpec((K_pad, tn), lambda i, j: (0, j)),
                    pl.BlockSpec((1, tn), lambda i, j: (0, j)),
                ],
                out_specs=pl.BlockSpec((tm, tn), lambda i, j: (i, j)),
            ),
            compiler_params=pltpu.CompilerParams(
                dimension_semantics=("parallel", "parallel")),
            cost_estimate=cost,
        )(patches, w_mat, bias_pad)
    else:
        out = pl.pallas_call(
            _matmul_bias_acc_kernel,
            out_shape=jax.ShapeDtypeStruct((M_pad, Cout_pad), x_nchw.dtype),
            grid_spec=pltpu.PrefetchScalarGridSpec(
                num_scalar_prefetch=0,
                grid=(M_pad // tm, Cout_pad // tn, K_pad // tk),
                in_specs=[
                    pl.BlockSpec((tm, tk), lambda i, j, k: (i, k)),
                    pl.BlockSpec((tk, tn), lambda i, j, k: (k, j)),
                    pl.BlockSpec((1, tn), lambda i, j, k: (0, j)),
                ],
                out_specs=pl.BlockSpec((tm, tn), lambda i, j, k: (i, j)),
                scratch_shapes=[pltpu.VMEM((tm, tn), jnp.float32)],
            ),
            compiler_params=pltpu.CompilerParams(
                dimension_semantics=("parallel", "parallel", "arbitrary")),
            cost_estimate=cost,
        )(patches, w_mat, bias_pad)

    # Strip padding, back to NCHW to match the PyTorch module's output.
    out = out[:M, :Cout].reshape(N, Ho, Wo, Cout)
    return jnp.transpose(out, (0, 3, 1, 2))


if __name__ == "__main__":
    # Shapes consistent with BasicConv2d(in_planes=4, out_planes=8,
    # kernel_size=3, stride=1, padding=1, dilation=1).
    N, Cin, H, W = 2, 4, 16, 16
    Cout, K = 8, 3
    stride, padding, dilation, eps = 1, 1, 1, 1e-5

    key = jax.random.PRNGKey(0)
    kx, kw, kg, kb, km, kv = jax.random.split(key, 6)

    x = jax.random.normal(kx, (N, Cin, H, W), dtype=jnp.float32)
    weight = jax.random.normal(kw, (Cout, Cin, K, K), dtype=jnp.float32) * 0.1
    gamma = 1.0 + 0.1 * jax.random.normal(kg, (Cout,), dtype=jnp.float32)
    beta = 0.1 * jax.random.normal(kb, (Cout,), dtype=jnp.float32)
    running_mean = 0.1 * jax.random.normal(km, (Cout,), dtype=jnp.float32)
    running_var = jnp.abs(jax.random.normal(kv, (Cout,), dtype=jnp.float32)) + 0.5

    out = basic_conv2d(x, weight, gamma, beta, running_mean, running_var,
                       stride=stride, padding=padding, dilation=dilation, eps=eps)
    jax.block_until_ready(out)
    assert out.shape == (N, Cout, H, W)

    # Reference: conv + eval-mode BN computed from the same bf16-rounded
    # operands (kernel accumulates in f32, so only accumulation-order noise).
    scale = gamma / jnp.sqrt(running_var + eps)
    bias = beta - running_mean * scale
    x_bf = x.astype(jnp.bfloat16).astype(jnp.float32)
    w_scaled_bf = (weight * scale[:, None, None, None]
                   ).astype(jnp.bfloat16).astype(jnp.float32)
    ref = lax.conv_general_dilated(
        x_bf, w_scaled_bf, window_strides=(stride, stride),
        padding=((padding, padding), (padding, padding)),
        rhs_dilation=(dilation, dilation),
        dimension_numbers=("NCHW", "OIHW", "NCHW"))
    ref = ref + bias[None, :, None, None]

    max_err = float(jnp.max(jnp.abs(out - ref)))
    assert jnp.allclose(out, ref, atol=1e-3, rtol=1e-3), f"max abs err {max_err}"

    print("KERNEL_OK")
</pallas_src>

<mosaic_0001>
module attributes {stable_mosaic.version = 11 : i64} {
  func.func @_matmul_bias_kernel(%arg0: i32, %arg1: i32, %arg2: memref<512x128xbf16, #tpu.memory_space<vmem>>, %arg3: memref<128x128xbf16, #tpu.memory_space<vmem>>, %arg4: memref<1x128xf32, #tpu.memory_space<vmem>>, %arg5: memref<512x128xf32, #tpu.memory_space<vmem>>) attributes {dimension_semantics = [#tpu.dimension_semantics<parallel>, #tpu.dimension_semantics<parallel>], iteration_bounds = array<i64: 1, 1>, scalar_prefetch = 0 : i64, scratch_operands = 0 : i64, tpu.core_type = #tpu.core_type<tc>, window_params = [{transform_indices = @transform_0, window_bounds = array<i64: 512, 128>}, {transform_indices = @transform_1, window_bounds = array<i64: 128, 128>}, {transform_indices = @transform_2, window_bounds = array<i64: 1, 128>}, {transform_indices = @transform_3, window_bounds = array<i64: 512, 128>}]} {
    %c0 = arith.constant 0 : index
    %c0_0 = arith.constant 0 : index
    %0 = vector.load %arg2[%c0, %c0_0] : memref<512x128xbf16, #tpu.memory_space<vmem>>, vector<512x128xbf16>
    %c0_1 = arith.constant 0 : index
    %c0_2 = arith.constant 0 : index
    %1 = vector.load %arg3[%c0_1, %c0_2] : memref<128x128xbf16, #tpu.memory_space<vmem>>, vector<128x128xbf16>
    %cst = arith.constant dense<0.000000e+00> : vector<512x128xf32>
    %2 = tpu.matmul %0, %1, %cst {dimension_numbers = #tpu.dot_dimension_numbers<[1], [0], [0], [1], [0, 0, 1, 1], [], []>} : vector<512x128xbf16>, vector<128x128xbf16>, vector<512x128xf32> -> vector<512x128xf32>
    %c0_3 = arith.constant 0 : index
    %c0_4 = arith.constant 0 : index
    %3 = vector.load %arg4[%c0_3, %c0_4] : memref<1x128xf32, #tpu.memory_space<vmem>>, vector<1x128xf32>
    %4 = vector.broadcast %3 : vector<1x128xf32> to vector<512x128xf32>
    %5 = arith.addf %2, %4 : vector<512x128xf32>
    %c0_5 = arith.constant 0 : index
    %c0_6 = arith.constant 0 : index
    %6 = vector.load %arg5[%c0_5, %c0_6] : memref<512x128xf32, #tpu.memory_space<vmem>>, vector<512x128xf32>
    tpu.vector_store %arg5[%c0_5, %c0_6], %5 {strides = array<i32>} : memref<512x128xf32, #tpu.memory_space<vmem>>, vector<512x128xf32>,
    return
  }
  func.func @transform_0(%arg0: i32, %arg1: i32) -> (i32, i32) {
    %c0_i32 = arith.constant 0 : i32
    %c0_i32_0 = arith.constant 0 : i32
    return %arg0, %c0_i32 : i32, i32
  }
  func.func @transform_1(%arg0: i32, %arg1: i32) -> (i32, i32) {
    %c0_i32 = arith.constant 0 : i32
    %c0_i32_0 = arith.constant 0 : i32
    return %c0_i32, %arg1 : i32, i32
  }
  func.func @transform_2(%arg0: i32, %arg1: i32) -> (i32, i32) {
    %c0_i32 = arith.constant 0 : i32
    %c0_i32_0 = arith.constant 0 : i32
    return %c0_i32, %arg1 : i32, i32
  }
  func.func @transform_3(%arg0: i32, %arg1: i32) -> (i32, i32) {
    %c0_i32 = arith.constant 0 : i32
    return %arg0, %arg1 : i32, i32
  }
}

</mosaic_0001>

<bundles_post_ra>
// kernel: tpu_custom_call.1
= control target key start
LH: loop header
LB: loop body
LE: loop exit
PB: predicated region body
PF: predicated region fallthrough
CT: control target
= control target key end

     0   :  { %8 = vsyncpa [#allocation3], 0  ;;  %s1039_s0 = inlined_call_operand.hbm [shape: bf16[512,128], index: 0, kind: input, shape index: {}]   ;;  %s1040_s1 = inlined_call_operand.hbm [shape: bf16[128,128], index: 1, kind: input, shape index: {}]   ;;  %s1041_s2 = inlined_call_operand.vmem [shape: f32[1,128], index: 2, kind: input, shape index: {}]   ;;  %s1042_s3 = inlined_call_operand.hbm [shape: f32[512,128], index: 3, kind: output, shape index: {}]  }
   0x1   :  { %9 = vsyncpa [#allocation6], 0 }
   0x2   :  { %10 = vsyncpa [#allocation4], 0  ;;  %s15_s14 = sshll.u32 %s1039_s0, 4  ;;  %s934_s15 = smov [#allocation2]   ;;  %s16_s14 = int_to_ptr.hbm [resolvable:$true] %s15_s14 }
   0x3   :  { %s17_s16 = sshll.u32 %s934_s15, 4  ;;  %s28_s19 = sshll.u32 %s1040_s1, 4  ;;  %s18_s16 = int_to_ptr.vmem [resolvable:$true] %s17_s16  ;;  %s29_s19 = int_to_ptr.hbm [resolvable:$true] %s28_s19 }
   0x4   :  { %s935_s20 = smov 64   ;;  %s936_s21 = smov 4  }
   0x5   :  { %23 = dma.hbm_to_vmem [thread:$0]  %s16_s14, 4096, %s18_s16, [#allocation3], %s935_s20, %s935_s20, %s936_s21  }
   0x6   :  { %s937_s22 = smov [#allocation5]  }
   0x7   :  { %s30_s23 = sshll.u32 %s937_s22, 4  ;;  %s31_s23 = int_to_ptr.vmem [resolvable:$true] %s30_s23 }
   0x8   :  { %36 = dma.hbm_to_vmem [thread:$0]  %s29_s19, 1024, %s31_s23, [#allocation6], %s935_s20, %s935_s20, %s936_s21  }
   0x9   :  { %928 = dma.done.wait [#allocation3], 4096  }
   0xa   :  { %929 = vsyncadd [#allocation3], 4294963200 }
   0xb   :  { %930 = dma.done.wait [#allocation6], 1024  }
   0xc   :  { %931 = vsyncadd [#allocation6], 4294966272  ;;  %v823_v0 = vld [vmem:[#allocation5 + $0x38] sm:$0xff]  ;;  %v822_v1 = vld [vmem:[#allocation5 + $0x30] sm:$0xff]  ;;  %s610_s27 = sshll.u32 %s1042_s3, 4  ;;  %s939_s28 = smov 128   ;;  %s611_s27 = int_to_ptr.hbm [resolvable:$true] %s610_s27 }
   0xd   :  { %371 = vmatpush.bf16.msra.mxu0 %v823_v0  ;;  %824 = vmatpush.bf16.msra.mxu1 %v823_v0  ;;  %v821_v2 = vld [vmem:[#allocation5 + $0x28] sm:$0xff]  ;;  %v820_v3 = vld [vmem:[#allocation5 + $0x20] sm:$0xff]  ;;  %v819_v4 = vld [vmem:[#allocation5 + $0x18] sm:$0xff]  ;;  %s940_s29 = smov 8  }
   0xe   :  { %825 = vmatpush.bf16.msra.mxu2 %v823_v0  ;;  %826 = vmatpush.bf16.msra.mxu3 %v823_v0  ;;  %v818_v5 = vld [vmem:[#allocation5 + $0x10] sm:$0xff]  ;;  %v817_v6 = vld [vmem:[#allocation5 + $0x8] sm:$0xff]  ;;  %v816_v7 = vld [vmem:[#allocation5] sm:$0xff] }
   0xf   :  { %v784_v8 = vld [vmem:[#allocation2] sm:$0xff]  ;;  %v785_v12 = vld [vmem:[#allocation2 + $0x8] sm:$0xff]  ;;  %v786_v16 = vld [vmem:[#allocation2 + $0x10] sm:$0xff] }
  0x10   :  { %v792_v9 = vld [vmem:[#allocation2 + $0x40] sm:$0xff]  ;;  %v793_v13 = vld [vmem:[#allocation2 + $0x48] sm:$0xff]  ;;  %v794_v17 = vld [vmem:[#allocation2 + $0x50] sm:$0xff] }
  0x11   :  { %372 = vmatpush.bf16.msra.mxu0 %v822_v1  ;;  %827 = vmatpush.bf16.msra.mxu1 %v822_v1  ;;  %v800_v10 = vld [vmem:[#allocation2 + $0x80] sm:$0xff]  ;;  %v801_v14 = vld [vmem:[#allocation2 + $0x88] sm:$0xff]  ;;  %v802_v18 = vld [vmem:[#allocation2 + $0x90] sm:$0xff] }
  0x12   :  { %828 = vmatpush.bf16.msra.mxu2 %v822_v1  ;;  %829 = vmatpush.bf16.msra.mxu3 %v822_v1  ;;  %v808_v11 = vld [vmem:[#allocation2 + $0xc0] sm:$0xff]  ;;  %v809_v15 = vld [vmem:[#allocation2 + $0xc8] sm:$0xff]  ;;  %v810_v19 = vld [vmem:[#allocation2 + $0xd0] sm:$0xff] }
  0x13   :  { %v787_v20 = vld [vmem:[#allocation2 + $0x18] sm:$0xff]  ;;  %v788_v24 = vld [vmem:[#allocation2 + $0x20] sm:$0xff]  ;;  %v789_v28 = vld [vmem:[#allocation2 + $0x28] sm:$0xff] }
  0x14   :  { %v795_v21 = vld [vmem:[#allocation2 + $0x58] sm:$0xff]  ;;  %v796_v25 = vld [vmem:[#allocation2 + $0x60] sm:$0xff]  ;;  %v797_v29 = vld [vmem:[#allocation2 + $0x68] sm:$0xff] }
  0x15   :  { %373 = vmatpush.bf16.msra.mxu0 %v821_v2  ;;  %830 = vmatpush.bf16.msra.mxu1 %v821_v2  ;;  %v803_v22 = vld [vmem:[#allocation2 + $0x98] sm:$0xff]  ;;  %v804_v26 = vld [vmem:[#allocation2 + $0xa0] sm:$0xff]  ;;  %v805_v30 = vld [vmem:[#allocation2 + $0xa8] sm:$0xff] }
  0x16   :  { %831 = vmatpush.bf16.msra.mxu2 %v821_v2  ;;  %832 = vmatpush.bf16.msra.mxu3 %v821_v2  ;;  %v811_v23 = vld [vmem:[#allocation2 + $0xd8] sm:$0xff]  ;;  %v812_v27 = vld [vmem:[#allocation2 + $0xe0] sm:$0xff]  ;;  %v813_v31 = vld [vmem:[#allocation2 + $0xe8] sm:$0xff] }
  0x17   :  { %v790_v32 = vld [vmem:[#allocation2 + $0x30] sm:$0xff]  ;;  %v791_v36 = vld [vmem:[#allocation2 + $0x38] sm:$0xff]  ;;  %v970_v40 = vld [vmem:[%s1041_s2] ss:$0 sm:$0xff]  ;;  %s938_s2 = smov [#allocation7]  }
  0x18   :  { %v798_v33 = vld [vmem:[#allocation2 + $0x70] sm:$0xff]  ;;  %v799_v37 = vld [vmem:[#allocation2 + $0x78] sm:$0xff]  ;;  %s608_s24 = sshll.u32 %s938_s2, 4  ;;  %s609_s24 = int_to_ptr.vmem [resolvable:$true] %s608_s24 }
  0x19   :  { %374 = vmatpush.bf16.msra.mxu0 %v820_v3  ;;  %833 = vmatpush.bf16.msra.mxu1 %v820_v3  ;;  %v806_v34 = vld [vmem:[#allocation2 + $0xb0] sm:$0xff]  ;;  %v807_v38 = vld [vmem:[#allocation2 + $0xb8] sm:$0xff] }
  0x1a   :  { %834 = vmatpush.bf16.msra.mxu2 %v820_v3  ;;  %835 = vmatpush.bf16.msra.mxu3 %v820_v3  ;;  %v814_v35 = vld [vmem:[#allocation2 + $0xf0] sm:$0xff]  ;;  %v815_v39 = vld [vmem:[#allocation2 + $0xf8] sm:$0xff] }
  0x1d   :  { %375 = vmatpush.bf16.msra.mxu0 %v819_v4  ;;  %836 = vmatpush.bf16.msra.mxu1 %v819_v4 }
  0x1e   :  { %837 = vmatpush.bf16.msra.mxu2 %v819_v4  ;;  %838 = vmatpush.bf16.msra.mxu3 %v819_v4 }
  0x21   :  { %376 = vmatpush.bf16.msra.mxu0 %v818_v5  ;;  %839 = vmatpush.bf16.msra.mxu1 %v818_v5 }
  0x22   :  { %840 = vmatpush.bf16.msra.mxu2 %v818_v5  ;;  %841 = vmatpush.bf16.msra.mxu3 %v818_v5 }
  0x25   :  { %377 = vmatpush.bf16.msra.mxu0 %v817_v6  ;;  %842 = vmatpush.bf16.msra.mxu1 %v817_v6 }
  0x26   :  { %843 = vmatpush.bf16.msra.mxu2 %v817_v6  ;;  %844 = vmatpush.bf16.msra.mxu3 %v817_v6 }
  0x29   :  { %378 = vmatpush.bf16.msra.mxu0 %v816_v7  ;;  %845 = vmatpush.bf16.msra.mxu1 %v816_v7 }
  0x2a   :  { %846 = vmatpush.bf16.msra.mxu2 %v816_v7  ;;  %847 = vmatpush.bf16.msra.mxu3 %v816_v7 }
  0x2c   :  { %379 = vmatmul.bf16.vlgmr.msra.gmra.mxu0 %v784_v8  ;;  %419 = vmatmul.bf16.vlgmr.msra.gmra.mxu1 %v792_v9 }
  0x2d   :  { %459 = vmatmul.bf16.vlgmr.msra.gmra.mxu2 %v800_v10  ;;  %499 = vmatmul.bf16.vlgmr.msra.gmra.mxu3 %v808_v11 }
  0x3c   :  { %384 = vmatmul.bf16.gmra.mxu0 %v785_v12  ;;  %424 = vmatmul.bf16.gmra.mxu1 %v793_v13 }
  0x3d   :  { %464 = vmatmul.bf16.gmra.mxu2 %v801_v14  ;;  %504 = vmatmul.bf16.gmra.mxu3 %v809_v15 }
  0x4c   :  { %389 = vmatmul.bf16.gmra.mxu0 %v786_v16  ;;  %429 = vmatmul.bf16.gmra.mxu1 %v794_v17 }
  0x4d   :  { %469 = vmatmul.bf16.gmra.mxu2 %v802_v18  ;;  %509 = vmatmul.bf16.gmra.mxu3 %v810_v19 }
  0x5c   :  { %394 = vmatmul.bf16.gmra.mxu0 %v787_v20  ;;  %434 = vmatmul.bf16.gmra.mxu1 %v795_v21 }
  0x5d   :  { %474 = vmatmul.bf16.gmra.mxu2 %v803_v22  ;;  %514 = vmatmul.bf16.gmra.mxu3 %v811_v23 }
  0x6c   :  { %399 = vmatmul.bf16.gmra.mxu0 %v788_v24  ;;  %439 = vmatmul.bf16.gmra.mxu1 %v796_v25 }
  0x6d   :  { %479 = vmatmul.bf16.gmra.mxu2 %v804_v26  ;;  %519 = vmatmul.bf16.gmra.mxu3 %v812_v27 }
  0x7c   :  { %404 = vmatmul.bf16.gmra.mxu0 %v789_v28  ;;  %444 = vmatmul.bf16.gmra.mxu1 %v797_v29 }
  0x7d   :  { %484 = vmatmul.bf16.gmra.mxu2 %v805_v30  ;;  %524 = vmatmul.bf16.gmra.mxu3 %v813_v31 }
  0x8c   :  { %409 = vmatmul.bf16.gmra.mxu0 %v790_v32  ;;  %449 = vmatmul.bf16.gmra.mxu1 %v798_v33 }
  0x8d   :  { %489 = vmatmul.bf16.gmra.mxu2 %v806_v34  ;;  %529 = vmatmul.bf16.gmra.mxu3 %v814_v35 }
  0x9c   :  { %414 = vmatmul.bf16.gmra.mxu0 %v791_v36  ;;  %454 = vmatmul.bf16.gmra.mxu1 %v799_v37 }
  0x9d   :  { %494 = vmatmul.bf16.gmra.mxu2 %v807_v38  ;;  %534 = vmatmul.bf16.gmra.mxu3 %v815_v39 }
  0xa9   :  { %v380_v41 = vpop.f32.mrf.mxu0  ;;  %v420_v42 = vpop.f32.mrf.mxu1 }
  0xaa   :  { %v381_v43 = vadd.f32 %v970_v40, %v380_v41  ;;  %v421_v44 = vadd.f32 %v970_v40, %v420_v42 }
  0xac   :  { %540 = vst [vmem:[#allocation7] sm:$0xff] %v381_v43 }
  0xad   :  { %556 = vst [vmem:[#allocation7 + $0x80] sm:$0xff] %v421_v44 }
  0xb0   :  { %v460_v45 = vpop.f32.mrf.mxu2  ;;  %v500_v46 = vpop.f32.mrf.mxu3 }
  0xb1   :  { %v461_v47 = vadd.f32 %v970_v40, %v460_v45  ;;  %v501_v48 = vadd.f32 %v970_v40, %v500_v46  ;;  %v382_v49 = vpop.f32.mrf.mxu0  ;;  %v422_v50 = vpop.f32.mrf.mxu1 }
  0xb2   :  { %v383_v51 = vadd.f32 %v970_v40, %v382_v49  ;;  %v423_v52 = vadd.f32 %v970_v40, %v422_v50 }
  0xb3   :  { %572 = vst [vmem:[#allocation7 + $0x100] sm:$0xff] %v461_v47 }
  0xb4   :  { %588 = vst [vmem:[#allocation7 + $0x180] sm:$0xff] %v501_v48 }
  0xb5   :  { %541 = vst [vmem:[#allocation7 + $0x8] sm:$0xff] %v383_v51 }
  0xb6   :  { %557 = vst [vmem:[#allocation7 + $0x88] sm:$0xff] %v423_v52 }
  0xb8   :  { %v462_v53 = vpop.f32.mrf.mxu2  ;;  %v502_v54 = vpop.f32.mrf.mxu3 }
  0xb9   :  { %v463_v55 = vadd.f32 %v970_v40, %v462_v53  ;;  %v503_v56 = vadd.f32 %v970_v40, %v502_v54  ;;  %v385_v57 = vpop.f32.mrf.mxu0  ;;  %v425_v58 = vpop.f32.mrf.mxu1 }
  0xba   :  { %v386_v59 = vadd.f32 %v970_v40, %v385_v57  ;;  %v426_v60 = vadd.f32 %v970_v40, %v425_v58 }
  0xbb   :  { %573 = vst [vmem:[#allocation7 + $0x108] sm:$0xff] %v463_v55 }
  0xbc   :  { %589 = vst [vmem:[#allocation7 + $0x188] sm:$0xff] %v503_v56 }
  0xbd   :  { %542 = vst [vmem:[#allocation7 + $0x10] sm:$0xff] %v386_v59 }
  0xbe   :  { %558 = vst [vmem:[#allocation7 + $0x90] sm:$0xff] %v426_v60 }
  0xc0   :  { %v465_v61 = vpop.f32.mrf.mxu2  ;;  %v505_v62 = vpop.f32.mrf.mxu3 }
  0xc1   :  { %v466_v63 = vadd.f32 %v970_v40, %v465_v61  ;;  %v506_v0 = vadd.f32 %v970_v40, %v505_v62  ;;  %v387_v1 = vpop.f32.mrf.mxu0  ;;  %v427_v2 = vpop.f32.mrf.mxu1 }
  0xc2   :  { %v388_v3 = vadd.f32 %v970_v40, %v387_v1  ;;  %v428_v4 = vadd.f32 %v970_v40, %v427_v2 }
  0xc3   :  { %574 = vst [vmem:[#allocation7 + $0x110] sm:$0xff] %v466_v63 }
  0xc4   :  { %590 = vst [vmem:[#allocation7 + $0x190] sm:$0xff] %v506_v0 }
  0xc5   :  { %543 = vst [vmem:[#allocation7 + $0x18] sm:$0xff] %v388_v3 }
  0xc6   :  { %559 = vst [vmem:[#allocation7 + $0x98] sm:$0xff] %v428_v4 }
  0xc8   :  { %v467_v5 = vpop.f32.mrf.mxu2  ;;  %v507_v6 = vpop.f32.mrf.mxu3 }
  0xc9   :  { %v468_v7 = vadd.f32 %v970_v40, %v467_v5  ;;  %v508_v8 = vadd.f32 %v970_v40, %v507_v6  ;;  %v390_v9 = vpop.f32.mrf.mxu0  ;;  %v430_v10 = vpop.f32.mrf.mxu1 }
  0xca   :  { %v391_v11 = vadd.f32 %v970_v40, %v390_v9  ;;  %v431_v12 = vadd.f32 %v970_v40, %v430_v10 }
  0xcb   :  { %575 = vst [vmem:[#allocation7 + $0x118] sm:$0xff] %v468_v7 }
  0xcc   :  { %591 = vst [vmem:[#allocation7 + $0x198] sm:$0xff] %v508_v8 }
  0xcd   :  { %544 = vst [vmem:[#allocation7 + $0x20] sm:$0xff] %v391_v11 }
  0xce   :  { %560 = vst [vmem:[#allocation7 + $0xa0] sm:$0xff] %v431_v12 }
  0xd0   :  { %v470_v13 = vpop.f32.mrf.mxu2  ;;  %v510_v14 = vpop.f32.mrf.mxu3 }
  0xd1   :  { %v471_v15 = vadd.f32 %v970_v40, %v470_v13  ;;  %v511_v16 = vadd.f32 %v970_v40, %v510_v14  ;;  %v392_v17 = vpop.f32.mrf.mxu0  ;;  %v432_v18 = vpop.f32.mrf.mxu1 }
  0xd2   :  { %v393_v19 = vadd.f32 %v970_v40, %v392_v17  ;;  %v433_v20 = vadd.f32 %v970_v40, %v432_v18 }
  0xd3   :  { %576 = vst [vmem:[#allocation7 + $0x120] sm:$0xff] %v471_v15 }
  0xd4   :  { %592 = vst [vmem:[#allocation7 + $0x1a0] sm:$0xff] %v511_v16 }
  0xd5   :  { %545 = vst [vmem:[#allocation7 + $0x28] sm:$0xff] %v393_v19 }
  0xd6   :  { %561 = vst [vmem:[#allocation7 + $0xa8] sm:$0xff] %v433_v20 }
  0xd8   :  { %v472_v21 = vpop.f32.mrf.mxu2  ;;  %v512_v22 = vpop.f32.mrf.mxu3 }
  0xd9   :  { %v473_v23 = vadd.f32 %v970_v40, %v472_v21  ;;  %v513_v24 = vadd.f32 %v970_v40, %v512_v22  ;;  %v395_v25 = vpop.f32.mrf.mxu0  ;;  %v435_v26 = vpop.f32.mrf.mxu1 }
  0xda   :  { %v396_v27 = vadd.f32 %v970_v40, %v395_v25  ;;  %v436_v28 = vadd.f32 %v970_v40, %v435_v26 }
  0xdb   :  { %577 = vst [vmem:[#allocation7 + $0x128] sm:$0xff] %v473_v23 }
  0xdc   :  { %593 = vst [vmem:[#allocation7 + $0x1a8] sm:$0xff] %v513_v24 }
  0xdd   :  { %546 = vst [vmem:[#allocation7 + $0x30] sm:$0xff] %v396_v27 }
  0xde   :  { %562 = vst [vmem:[#allocation7 + $0xb0] sm:$0xff] %v436_v28 }
  0xe0   :  { %v475_v29 = vpop.f32.mrf.mxu2  ;;  %v515_v30 = vpop.f32.mrf.mxu3 }
  0xe1   :  { %v476_v31 = vadd.f32 %v970_v40, %v475_v29  ;;  %v516_v32 = vadd.f32 %v970_v40, %v515_v30  ;;  %v397_v33 = vpop.f32.mrf.mxu0  ;;  %v437_v34 = vpop.f32.mrf.mxu1 }
  0xe2   :  { %v398_v35 = vadd.f32 %v970_v40, %v397_v33  ;;  %v438_v36 = vadd.f32 %v970_v40, %v437_v34 }
  0xe3   :  { %578 = vst [vmem:[#allocation7 + $0x130] sm:$0xff] %v476_v31 }
  0xe4   :  { %594 = vst [vmem:[#allocation7 + $0x1b0] sm:$0xff] %v516_v32 }
  0xe5   :  { %547 = vst [vmem:[#allocation7 + $0x38] sm:$0xff] %v398_v35 }
  0xe6   :  { %563 = vst [vmem:[#allocation7 + $0xb8] sm:$0xff] %v438_v36 }
  0xe8   :  { %v477_v37 = vpop.f32.mrf.mxu2  ;;  %v517_v38 = vpop.f32.mrf.mxu3 }
  0xe9   :  { %v478_v39 = vadd.f32 %v970_v40, %v477_v37  ;;  %v518_v41 = vadd.f32 %v970_v40, %v517_v38  ;;  %v400_v42 = vpop.f32.mrf.mxu0  ;;  %v440_v43 = vpop.f32.mrf.mxu1 }
  0xea   :  { %v401_v44 = vadd.f32 %v970_v40, %v400_v42  ;;  %v441_v45 = vadd.f32 %v970_v40, %v440_v43 }
  0xeb   :  { %579 = vst [vmem:[#allocation7 + $0x138] sm:$0xff] %v478_v39 }
  0xec   :  { %595 = vst [vmem:[#allocation7 + $0x1b8] sm:$0xff] %v518_v41 }
  0xed   :  { %548 = vst [vmem:[#allocation7 + $0x40] sm:$0xff] %v401_v44 }
  0xee   :  { %564 = vst [vmem:[#allocation7 + $0xc0] sm:$0xff] %v441_v45 }
  0xf0   :  { %v480_v46 = vpop.f32.mrf.mxu2  ;;  %v520_v47 = vpop.f32.mrf.mxu3 }
  0xf1   :  { %v481_v48 = vadd.f32 %v970_v40, %v480_v46  ;;  %v521_v49 = vadd.f32 %v970_v40, %v520_v47  ;;  %v402_v50 = vpop.f32.mrf.mxu0  ;;  %v442_v51 = vpop.f32.mrf.mxu1 }
  0xf2   :  { %v403_v52 = vadd.f32 %v970_v40, %v402_v50  ;;  %v443_v53 = vadd.f32 %v970_v40, %v442_v51 }
  0xf3   :  { %580 = vst [vmem:[#allocation7 + $0x140] sm:$0xff] %v481_v48 }
  0xf4   :  { %596 = vst [vmem:[#allocation7 + $0x1c0] sm:$0xff] %v521_v49 }
  0xf5   :  { %549 = vst [vmem:[#allocation7 + $0x48] sm:$0xff] %v403_v52 }
  0xf6   :  { %565 = vst [vmem:[#allocation7 + $0xc8] sm:$0xff] %v443_v53 }
  0xf8   :  { %v482_v54 = vpop.f32.mrf.mxu2  ;;  %v522_v55 = vpop.f32.mrf.mxu3 }
  0xf9   :  { %v483_v56 = vadd.f32 %v970_v40, %v482_v54  ;;  %v523_v57 = vadd.f32 %v970_v40, %v522_v55  ;;  %v405_v58 = vpop.f32.mrf.mxu0  ;;  %v445_v59 = vpop.f32.mrf.mxu1 }
  0xfa   :  { %v406_v60 = vadd.f32 %v970_v40, %v405_v58  ;;  %v446_v61 = vadd.f32 %v970_v40, %v445_v59 }
  0xfb   :  { %581 = vst [vmem:[#allocation7 + $0x148] sm:$0xff] %v483_v56 }
  0xfc   :  { %597 = vst [vmem:[#allocation7 + $0x1c8] sm:$0xff] %v523_v57 }
  0xfd   :  { %550 = vst [vmem:[#allocation7 + $0x50] sm:$0xff] %v406_v60 }
  0xfe   :  { %566 = vst [vmem:[#allocation7 + $0xd0] sm:$0xff] %v446_v61 }
 0x100   :  { %v485_v62 = vpop.f32.mrf.mxu2  ;;  %v525_v63 = vpop.f32.mrf.mxu3 }
 0x101   :  { %v486_v0 = vadd.f32 %v970_v40, %v485_v62  ;;  %v526_v1 = vadd.f32 %v970_v40, %v525_v63  ;;  %v407_v2 = vpop.f32.mrf.mxu0  ;;  %v447_v3 = vpop.f32.mrf.mxu1 }
 0x102   :  { %v408_v4 = vadd.f32 %v970_v40, %v407_v2  ;;  %v448_v5 = vadd.f32 %v970_v40, %v447_v3 }
 0x103   :  { %582 = vst [vmem:[#allocation7 + $0x150] sm:$0xff] %v486_v0 }
 0x104   :  { %598 = vst [vmem:[#allocation7 + $0x1d0] sm:$0xff] %v526_v1 }
 0x105   :  { %551 = vst [vmem:[#allocation7 + $0x58] sm:$0xff] %v408_v4 }
 0x106   :  { %567 = vst [vmem:[#allocation7 + $0xd8] sm:$0xff] %v448_v5 }
 0x108   :  { %v487_v6 = vpop.f32.mrf.mxu2  ;;  %v527_v7 = vpop.f32.mrf.mxu3 }
 0x109   :  { %v488_v8 = vadd.f32 %v970_v40, %v487_v6  ;;  %v528_v9 = vadd.f32 %v970_v40, %v527_v7  ;;  %v410_v10 = vpop.f32.mrf.mxu0  ;;  %v450_v11 = vpop.f32.mrf.mxu1 }
 0x10a   :  { %v411_v12 = vadd.f32 %v970_v40, %v410_v10  ;;  %v451_v13 = vadd.f32 %v970_v40, %v450_v11 }
 0x10b   :  { %583 = vst [vmem:[#allocation7 + $0x158] sm:$0xff] %v488_v8 }
 0x10c   :  { %599 = vst [vmem:[#allocation7 + $0x1d8] sm:$0xff] %v528_v9 }
 0x10d   :  { %552 = vst [vmem:[#allocation7 + $0x60] sm:$0xff] %v411_v12 }
 0x10e   :  { %568 = vst [vmem:[#allocation7 + $0xe0] sm:$0xff] %v451_v13 }
 0x110   :  { %v490_v14 = vpop.f32.mrf.mxu2  ;;  %v530_v15 = vpop.f32.mrf.mxu3 }
 0x111   :  { %v491_v16 = vadd.f32 %v970_v40, %v490_v14  ;;  %v531_v17 = vadd.f32 %v970_v40, %v530_v15  ;;  %v412_v18 = vpop.f32.mrf.mxu0  ;;  %v452_v19 = vpop.f32.mrf.mxu1 }
 0x112   :  { %v413_v20 = vadd.f32 %v970_v40, %v412_v18  ;;  %v453_v21 = vadd.f32 %v970_v40, %v452_v19 }
 0x113   :  { %584 = vst [vmem:[#allocation7 + $0x160] sm:$0xff] %v491_v16 }
 0x114   :  { %600 = vst [vmem:[#allocation7 + $0x1e0] sm:$0xff] %v531_v17 }
 0x115   :  { %553 = vst [vmem:[#allocation7 + $0x68] sm:$0xff] %v413_v20 }
 0x116   :  { %569 = vst [vmem:[#allocation7 + $0xe8] sm:$0xff] %v453_v21 }
 0x118   :  { %v492_v22 = vpop.f32.mrf.mxu2  ;;  %v532_v23 = vpop.f32.mrf.mxu3 }
 0x119   :  { %v493_v24 = vadd.f32 %v970_v40, %v492_v22  ;;  %v533_v25 = vadd.f32 %v970_v40, %v532_v23  ;;  %v415_v26 = vpop.f32.mrf.mxu0  ;;  %v455_v27 = vpop.f32.mrf.mxu1 }
 0x11a   :  { %v416_v28 = vadd.f32 %v970_v40, %v415_v26  ;;  %v456_v29 = vadd.f32 %v970_v40, %v455_v27 }
 0x11b   :  { %585 = vst [vmem:[#allocation7 + $0x168] sm:$0xff] %v493_v24 }
 0x11c   :  { %601 = vst [vmem:[#allocation7 + $0x1e8] sm:$0xff] %v533_v25 }
 0x11d   :  { %554 = vst [vmem:[#allocation7 + $0x70] sm:$0xff] %v416_v28 }
 0x11e   :  { %570 = vst [vmem:[#allocation7 + $0xf0] sm:$0xff] %v456_v29 }
 0x120   :  { %v495_v30 = vpop.f32.mrf.mxu2  ;;  %v535_v31 = vpop.f32.mrf.mxu3 }
 0x121   :  { %v496_v32 = vadd.f32 %v970_v40, %v495_v30  ;;  %v536_v33 = vadd.f32 %v970_v40, %v535_v31  ;;  %v417_v34 = vpop.f32.mrf.mxu0  ;;  %v457_v35 = vpop.f32.mrf.mxu1 }
 0x122   :  { %v418_v36 = vadd.f32 %v970_v40, %v417_v34  ;;  %v458_v37 = vadd.f32 %v970_v40, %v457_v35 }
 0x123   :  { %586 = vst [vmem:[#allocation7 + $0x170] sm:$0xff] %v496_v32 }
 0x124   :  { %602 = vst [vmem:[#allocation7 + $0x1f0] sm:$0xff] %v536_v33 }
 0x125   :  { %555 = vst [vmem:[#allocation7 + $0x78] sm:$0xff] %v418_v36 }
 0x126   :  { %571 = vst [vmem:[#allocation7 + $0xf8] sm:$0xff] %v458_v37 }
 0x128   :  { %v497_v38 = vpop.f32.mrf.mxu2  ;;  %v537_v39 = vpop.f32.mrf.mxu3 }
 0x129   :  { %v498_v41 = vadd.f32 %v970_v40, %v497_v38  ;;  %v538_v42 = vadd.f32 %v970_v40, %v537_v39 }
 0x12b   :  { %587 = vst [vmem:[#allocation7 + $0x178] sm:$0xff] %v498_v41 }
 0x12c   :  { %603 = vst [vmem:[#allocation7 + $0x1f8] sm:$0xff] %v538_v42 }
 0x12d   :  { %616 = dma.vmem_to_hbm [thread:$0]  %s609_s24, 8192, %s611_s27, [#allocation4], %s939_s28, %s939_s28, %s940_s29  }
 0x12e   :  { %932 = dma.done.wait [#allocation4], 8192  }
 0x12f   :  { %933 = vsyncadd [#allocation4], 4294959104 }
 0x130   :  { %621 = vsyncpa [#allocation3], 1 }
 0x131   :  { %622 = vsyncpa [#allocation6], 1 }
 0x132   :  { %623 = vsyncpa [#allocation4], 1 }

</bundles_post_ra>
